<compile_context>
chip_gen: v7x
topology: tpu7x:2x2x1
jax: 0.10.0
libtpu: 0.0.40
codegen_flags: <defaults>
</compile_context>

<pallas_src>
import functools
import math

import jax
import jax.numpy as jnp
import numpy as np
from jax.experimental import pallas as pl
from jax.experimental.pallas import tpu as pltpu


# ---------------------------------------------------------------------------
# Pallas kernel
# ---------------------------------------------------------------------------

def _pixelnorm_kernel(eps, sqrt_c, x_ref, o_ref):
    x = x_ref[...].astype(jnp.float32)                           # (1, C, T)
    # ||x||_2 over channels (sublane reduction on the XLU).
    norm = jnp.sqrt(jnp.sum(x * x, axis=1, keepdims=True))       # (1, 1, T)
    inv = pl.reciprocal(norm + eps, approx=True)                 # EUP slot (off the VALU path)
    o_ref[...] = (x * (inv * sqrt_c)).astype(o_ref.dtype)


def _spatial_tile(hw, c, itemsize, budget_bytes=4 * 1024 * 1024):
    # Largest multiple-of-128 divisor of hw whose (C, tile) block fits the per-buffer budget.
    if hw % 128 != 0:
        return hw            # block dim == full array dim is always a legal block shape
    best = 128
    for t in range(128, hw + 1, 128):
        if hw % t == 0 and c * t * itemsize <= budget_bytes:
            best = t
    return best


def pixel_norm(x_nchw, eps=1e-8):
    n, c, h, w = x_nchw.shape
    hw = h * w
    x3 = x_nchw.reshape(n, c, hw)                                # free reshape, stays NCHW
    t = _spatial_tile(hw, c, jnp.dtype(x_nchw.dtype).itemsize)
    kernel = functools.partial(_pixelnorm_kernel, eps, math.sqrt(c))
    y = pl.pallas_call(
        kernel,
        out_shape=jax.ShapeDtypeStruct((n, c, hw), x_nchw.dtype),
        grid=(n, hw // t),
        in_specs=[pl.BlockSpec((1, c, t), lambda i, j: (i, 0, j))],
        out_specs=pl.BlockSpec((1, c, t), lambda i, j: (i, 0, j)),
        compiler_params=pltpu.CompilerParams(
            dimension_semantics=("parallel", "parallel"),        # independent pixels
        ),
    )(x3)
    return y.reshape(n, c, h, w)


# ---------------------------------------------------------------------------
# Pure-JAX reference of the PyTorch forward (for the correctness check)
# ---------------------------------------------------------------------------

def pixel_norm_ref(x, eps=1e-8):
    c = x.shape[1]
    norm = jnp.sqrt(jnp.sum(x.astype(jnp.float32) ** 2, axis=1, keepdims=True))
    return (x * math.sqrt(c) / (norm + eps)).astype(x.dtype)


if __name__ == "__main__":
    key = jax.random.PRNGKey(0)
    # Small NCHW input consistent with the module: batch=2, channels=4, spatial=16.
    x = jax.random.normal(key, (2, 4, 16, 16), jnp.float32)

    out = jax.jit(pixel_norm)(x)
    out = jax.block_until_ready(out)

    ref = pixel_norm_ref(x)
    np.testing.assert_allclose(np.asarray(out), np.asarray(ref), rtol=5e-3, atol=5e-3)

    print("KERNEL_OK")
</pallas_src>

<mosaic_0001>
module attributes {stable_mosaic.version = 11 : i64} {
  func.func @_pixelnorm_kernel(%arg0: i32, %arg1: i32, %arg2: memref<1x4x256xf32, #tpu.memory_space<vmem>>, %arg3: memref<1x4x256xf32, #tpu.memory_space<vmem>>) attributes {dimension_semantics = [#tpu.dimension_semantics<parallel>, #tpu.dimension_semantics<parallel>], iteration_bounds = array<i64: 2, 1>, scalar_prefetch = 0 : i64, scratch_operands = 0 : i64, tpu.core_type = #tpu.core_type<tc>, window_params = [{transform_indices = @transform_0, window_bounds = array<i64: 1, 4, 256>}, {transform_indices = @transform_1, window_bounds = array<i64: 1, 4, 256>}]} {
    %c0 = arith.constant 0 : index
    %c0_0 = arith.constant 0 : index
    %c0_1 = arith.constant 0 : index
    %0 = vector.load %arg2[%c0, %c0_0, %c0_1] : memref<1x4x256xf32, #tpu.memory_space<vmem>>, vector<1x4x256xf32>
    %1 = arith.mulf %0, %0 : vector<1x4x256xf32>
    %cst = arith.constant dense<0.000000e+00> : vector<1x256xf32>
    %2 = vector.multi_reduction <add>, %1, %cst [1] : vector<1x4x256xf32> to vector<1x256xf32>
    %3 = vector.shape_cast %2 : vector<1x256xf32> to vector<1x1x256xf32>
    %4 = math.sqrt %3 : vector<1x1x256xf32>
    %cst_2 = arith.constant 9.99999993E-9 : f32
    %5 = vector.broadcast %cst_2 : f32 to vector<1x1x256xf32>
    %6 = arith.addf %4, %5 : vector<1x1x256xf32>
    %7 = tpu.reciprocal %6 {approx = true} : vector<1x1x256xf32> -> vector<1x1x256xf32>
    %cst_3 = arith.constant 2.000000e+00 : f32
    %8 = vector.broadcast %cst_3 : f32 to vector<1x1x256xf32>
    %9 = arith.mulf %7, %8 : vector<1x1x256xf32>
    %10 = vector.broadcast %9 : vector<1x1x256xf32> to vector<1x4x256xf32>
    %11 = arith.mulf %0, %10 : vector<1x4x256xf32>
    %c0_4 = arith.constant 0 : index
    %c0_5 = arith.constant 0 : index
    %c0_6 = arith.constant 0 : index
    %12 = vector.load %arg3[%c0_4, %c0_5, %c0_6] : memref<1x4x256xf32, #tpu.memory_space<vmem>>, vector<1x4x256xf32>
    tpu.vector_store %arg3[%c0_4, %c0_5, %c0_6], %11 {strides = array<i32>} : memref<1x4x256xf32, #tpu.memory_space<vmem>>, vector<1x4x256xf32>,
    return
  }
  func.func @transform_0(%arg0: i32, %arg1: i32) -> (i32, i32, i32) {
    %c0_i32 = arith.constant 0 : i32
    %c0_i32_0 = arith.constant 0 : i32
    return %arg0, %c0_i32, %arg1 : i32, i32, i32
  }
  func.func @transform_1(%arg0: i32, %arg1: i32) -> (i32, i32, i32) {
    %c0_i32 = arith.constant 0 : i32
    %c0_i32_0 = arith.constant 0 : i32
    return %arg0, %c0_i32, %arg1 : i32, i32, i32
  }
}

</mosaic_0001>

<bundles_post_ra>
// kernel: pixel_norm.1
= control target key start
LH: loop header
LB: loop body
LE: loop exit
PB: predicated region body
PF: predicated region fallthrough
CT: control target
= control target key end

     0   :  { %s368_s6 = smov 0   ;;  %s370_s7 = smov 0   ;;  %s408_s0 = inlined_call_operand.vmem [shape: f32[2,4,256], index: 0, kind: input, shape index: {}]   ;;  %s409_s1 = inlined_call_operand.vmem [shape: f32[2,4,256], index: 1, kind: output, shape index: {}]  }
   0x1   :  { %s372_s8 = smov 0  }
   0x2 LB: > { %s23_s9 = sadd.s32 1, %s352_s7  ;;  %p293_p0 = scmp.ge.s32.totalorder %s356_s8, 1  ;;  %s356_s8 = sphi %s372_s8, %s11_s8   ;;  %s352_s7 = sphi %s370_s7, %s411_s7   ;;  %s348_s6 = sphi %s368_s6, %s410_s6  }
   0x3   : > { %p25_p1 = scmp.ge.s32.totalorder %s23_s9, 2  ;;  %p108_p2 = scmp.lt.s32.totalorder %s356_s8, 3 }
   0x5   : > { %s413_s9 = smov (%p25_p1, %s23_s9), 0  ;;  %p109_p3 = pnand %p293_p0, %p108_p2 }
   0x6   : > { %p137_p4 = scmp.lt.s32.totalorder (!%p109_p3), %s348_s6, 1  ;;  %vm161_vm0 = vcmask (!%p109_p3), 1043456  }
   0x7   : > { %112 = sbr.rel (%p109_p3) target bundleno = 70 (0x46), region = 24 }
   0xe   : > { %s415_s6 = smov (!%p137_p4, %s348_s6), 1 }
   0xf   : > { %s300_s10 = sshll.u32 %s415_s6, 3 }
  0x10   : > { %s144_s13 = scalar_lea.vmem %s408_s0, %s300_s10  ;;  %s154_s16 = scalar_lea.vmem %s409_s1, %s300_s10 }
  0x11   : > { %v156_v0 = vld [vmem:[%s144_s13] sm:$0xff] }
  0x12   : > { %v157_v1 = vmul.f32 %v156_v0, %v156_v0 }
  0x14   : > { %v159_v2 = vcombine.high %v157_v1, %v157_v1  ;;  %v162_v3 = vsel %vm161_vm0, %v157_v1, 0.0 }
  0x15   : > { %v163_v4 = vrot.slane %v162_v3, 4 }
  0x16   : > { %v169_v5 = vsel %vm161_vm0, %v159_v2, 0.0 }
  0x17   : > { %v164_v6 = vadd.f32 %v163_v4, %v162_v3  ;;  %v170_v7 = vrot.slane %v169_v5, 4 }
  0x19   : > { %v165_v8 = vrot.slane %v164_v6, 2  ;;  %v171_v9 = vadd.f32 %v170_v7, %v169_v5 }
  0x1b   : > { %v166_v10 = vadd.f32 %v165_v8, %v164_v6  ;;  %v172_v11 = vrot.slane %v171_v9, 2 }
  0x1d   : > { %v167_v12 = vrot.slane %v166_v10, 1  ;;  %v173_v13 = vadd.f32 %v172_v11, %v171_v9 }
  0x1f   : > { %v168_v14 = vadd.f32 %v167_v12, %v166_v10  ;;  %v174_v15 = vrot.slane %v173_v13, 1 }
  0x21   : > { %v175_v16 = vadd.f32 %v174_v15, %v173_v13  ;;  %326 = vrsqrt.f32 %v168_v14  ;;  %vm178_vm1 = vcmp.eq.f32.partialorder %v168_v14, inf  ;;  %v181_v18 = vand.u32 2147483648, %v168_v14 }
  0x22   : > { %vm180_vm2 = vcmp.eq.f32.partialorder %v168_v14, 0.0 }
  0x23   : > { %328 = vrsqrt.f32 %v175_v16  ;;  %vm185_vm3 = vcmp.eq.f32.partialorder %v175_v16, inf  ;;  %v188_v21 = vand.u32 2147483648, %v175_v16  ;;  %vm187_vm4 = vcmp.eq.f32.partialorder %v175_v16, 0.0 }
  0x2b   : > { %v327_v17 = vpop.eup %326 }
  0x2c   : > { %v177_v19 = vmul.f32 %v327_v17, %v168_v14 }
  0x2d   : > { %v329_v20 = vpop.eup %328 }
  0x2e   : > { %v179_v22 = vsel %vm178_vm1, %v168_v14, %v177_v19  ;;  %v184_v23 = vmul.f32 %v329_v20, %v175_v16 }
  0x2f   : > { %v182_v24 = vsel %vm180_vm2, %v181_v18, %v179_v22 }
  0x30   : > { %v186_v25 = vsel %vm185_vm3, %v175_v16, %v184_v23  ;;  %v190_v26 = vadd.f32 1e-08, %v182_v24 }
  0x31   : > { %v189_v27 = vsel %vm187_vm4, %v188_v21, %v186_v25 }
  0x32   : > { %v191_v28 = vadd.f32 1e-08, %v189_v27  ;;  %330 = vrcp.f32 %v190_v26 }
  0x34   : > { %332 = vrcp.f32 %v191_v28 }
  0x3c   : > { %v331_v29 = vpop.eup %330 }
  0x3d   : > { %v194_v30 = vmul.f32 2.0, %v331_v29 }
  0x3e   : > { %v333_v31 = vpop.eup %332 }
  0x3f   : > { %v195_v32 = vmul.f32 2.0, %v333_v31 }
  0x41   : > { %v198_v33 = vcombine.low %v194_v30, %v195_v32 }
  0x43   : > { %v200_v34 = vmul.f32 %v198_v33, %v156_v0 }
  0x45   : > { %201 = vst [vmem:[%s154_s16] sm:$0xff] %v200_v34 }
  0x46 PF: > { %s11_s8 = sadd.s32 1, %s356_s8   ;;  %s410_s6 = smov %s352_s7 }
  0x47   : > { %p8_p5 = scmp.ge.s32.totalorder %s11_s8, 4   ;;  %s411_s7 = smov %s413_s9 }
  0x49   :  { %10 = sbr.rel (!%p8_p5) target bundleno = 2 (0x2), region = 54 }

</bundles_post_ra>
